<compile_context>
chip_gen: v5e
topology: v5e:2x2
jax: 0.10.0
libtpu: 0.0.40
codegen_flags: <defaults>
</compile_context>

<pallas_src>
import jax
import jax.numpy as jnp
from jax.experimental import pallas as pl
from jax.experimental.pallas import tpu as pltpu


def _fused_block_kernel(x_ref, scale_ref, bias_ref, w_ref, pool_ref, o_ref):
    # x_ref:     (1, Cin, H*W)      f32   one image, spatial flattened on lanes
    # scale_ref: (Cin, 1)           f32   folded BN scale        (resident)
    # bias_ref:  (Cin, 1)           f32   folded BN bias         (resident)
    # w_ref:     (2, Cout//2, Cin)  bf16  1x1-conv weight, even/odd out rows (resident)
    # pool_ref:  (H*W, Hp*Wp)       bf16  2x2 avg-pool operator  (resident constant)
    # o_ref:     (1, Cout//2, 2*Hp*Wp)    lane-dense (last dim multiple of 128)
    x = x_ref[0]                                                  # (Cin, HW)

    # fused BN(eval) + ReLU in f32 on fully lane-dense vregs
    z = jnp.maximum(x * scale_ref[...] + bias_ref[...], 0.0)

    # 2x2 average pool over the lane (spatial) axis on the MXU,
    # bf16 operands / f32 accumulation (native MXU path).
    p = jnp.dot(z.astype(jnp.bfloat16), pool_ref[...],
                preferred_element_type=jnp.float32)               # (Cin, HpWp)
    p16 = p.astype(jnp.bfloat16)

    # 1x1 conv (channel mixing).  Even / odd output channels are computed
    # separately and packed side-by-side along lanes so the store is an
    # unmasked, lane-dense (Cout//2, 2*Hp*Wp) write.
    o_even = jnp.dot(w_ref[0], p16, preferred_element_type=jnp.float32)
    o_odd = jnp.dot(w_ref[1], p16, preferred_element_type=jnp.float32)
    o_ref[0] = jnp.concatenate([o_even, o_odd], axis=-1).astype(o_ref.dtype)


def fused_block_forward(x_nchw, gamma, beta, running_mean, running_var, conv_w,
                        eps=1e-5):
    n, cin, h, w = x_nchw.shape
    cout = conv_w.shape[0]
    assert h % 2 == 0 and w % 2 == 0, "2x2 average pool needs even H, W"
    assert cout % 2 == 0, "lane-dense output packing pairs output channels"
    hp, wp = h // 2, w // 2

    # --- wrapper glue: free reshapes + O(channels) scalar math only ---
    x3 = x_nchw.reshape(n, cin, h * w)                       # no data movement

    inv_std = 1.0 / jnp.sqrt(running_var + eps)
    scale = (gamma * inv_std).astype(jnp.float32).reshape(cin, 1)
    bias = (beta - running_mean * gamma * inv_std).astype(jnp.float32).reshape(cin, 1)

    # 1x1-conv weight, bf16, split into even/odd output channels for the
    # lane-dense output packing.  Single (Cout, Cin)-sized weight, VMEM-resident
    # across all batch grid steps (no O(N^2) kron block-diagonal).
    w2 = conv_w.reshape(cout, cin)
    w_stacked = jnp.stack([w2[0::2], w2[1::2]], axis=0).astype(jnp.bfloat16)

    # 2x2 average-pool operator: compile-time constant, built ONCE here
    # (not per kernel invocation) and kept VMEM-resident.
    #   P[r*W + c, rp*Wp + cp] = 0.25  iff  (r//2, c//2) == (rp, cp)
    # 0.25 is exact in bf16, so the pool matmul introduces no extra rounding.
    src = jnp.arange(h * w, dtype=jnp.int32)
    dst = jnp.arange(hp * wp, dtype=jnp.int32)
    hit = (((src[:, None] // w) // 2) == (dst[None, :] // wp)) & \
          (((src[:, None] % w) // 2) == (dst[None, :] % wp))
    pool_op = jnp.where(hit, 0.25, 0.0).astype(jnp.bfloat16)     # (HW, HpWp)

    out = pl.pallas_call(
        _fused_block_kernel,
        out_shape=jax.ShapeDtypeStruct((n, cout // 2, 2 * hp * wp), x_nchw.dtype),
        grid=(n,),                                   # one image per grid step
        in_specs=[
            pl.BlockSpec((1, cin, h * w), lambda i: (i, 0, 0)),
            pl.BlockSpec((cin, 1), lambda i: (0, 0)),
            pl.BlockSpec((cin, 1), lambda i: (0, 0)),
            pl.BlockSpec((2, cout // 2, cin), lambda i: (0, 0, 0)),
            pl.BlockSpec((h * w, hp * wp), lambda i: (0, 0)),
        ],
        out_specs=pl.BlockSpec((1, cout // 2, 2 * hp * wp), lambda i: (i, 0, 0)),
        compiler_params=pltpu.CompilerParams(
            dimension_semantics=("parallel",)),      # shards across TCs on v7x
    )(x3, scale, bias, w_stacked, pool_op)

    # (N, Cout//2, 2*Hp*Wp) row-major == (N, Cout, Hp, Wp) row-major: free reshape.
    return out.reshape(n, cout, hp, wp)


def fused_block_reference(x, gamma, beta, mean, var, conv_w, eps=1e-5):
    # Pure-JAX reference of the same block: BN(eval) -> ReLU -> 1x1 conv ->
    # 2x2 avg pool.  The 1x1 conv and the average pool commute (both linear,
    # acting on disjoint axes), and the reference mirrors the kernel's
    # precision choice: bf16 matmul operands with f32 accumulation.
    inv_std = 1.0 / jnp.sqrt(var + eps)
    z = x * (gamma * inv_std)[None, :, None, None] \
        + (beta - mean * gamma * inv_std)[None, :, None, None]
    z = jnp.maximum(z, 0.0)
    n, c, h, w = z.shape

    z16 = z.astype(jnp.bfloat16).astype(jnp.float32)
    p = z16.reshape(n, c, h // 2, 2, w // 2, 2).sum(axis=(3, 5)) * 0.25
    w2 = conv_w.reshape(conv_w.shape[0], -1).astype(jnp.bfloat16)
    out = jnp.einsum('oc,nchw->nohw', w2, p.astype(jnp.bfloat16),
                     preferred_element_type=jnp.float32)
    return out


if __name__ == "__main__":
    in_planes, out_planes = 4, 8
    N, H, W = 2, 16, 16

    key = jax.random.PRNGKey(0)
    k_x, k_g, k_b, k_m, k_v, k_w = jax.random.split(key, 6)

    x = jax.random.normal(k_x, (N, in_planes, H, W), dtype=jnp.float32)

    gamma = 1.0 + 0.1 * jax.random.normal(k_g, (in_planes,), dtype=jnp.float32)
    beta = 0.1 * jax.random.normal(k_b, (in_planes,), dtype=jnp.float32)
    running_mean = 0.1 * jax.random.normal(k_m, (in_planes,), dtype=jnp.float32)
    running_var = jnp.abs(jax.random.normal(k_v, (in_planes,), dtype=jnp.float32)) + 0.5
    conv_w = (jax.random.normal(k_w, (out_planes, in_planes, 1, 1), dtype=jnp.float32)
              / jnp.sqrt(in_planes))

    out = fused_block_forward(x, gamma, beta, running_mean, running_var, conv_w)
    out = jax.block_until_ready(out)

    ref = fused_block_reference(x, gamma, beta, running_mean, running_var, conv_w)
    assert out.shape == (N, out_planes, H // 2, W // 2), out.shape
    max_err = float(jnp.abs(out - ref).max())
    assert jnp.allclose(out, ref, rtol=1e-3, atol=1e-3), max_err

    print("KERNEL_OK")
</pallas_src>

<mosaic_0001>
module attributes {stable_mosaic.version = 11 : i64} {
  func.func @_fused_block_kernel(%arg0: i32, %arg1: memref<1x4x256xf32, #tpu.memory_space<vmem>>, %arg2: memref<4x1xf32, #tpu.memory_space<vmem>>, %arg3: memref<4x1xf32, #tpu.memory_space<vmem>>, %arg4: memref<2x4x4xbf16, #tpu.memory_space<vmem>>, %arg5: memref<256x64xbf16, #tpu.memory_space<vmem>>, %arg6: memref<1x4x128xf32, #tpu.memory_space<vmem>>) attributes {dimension_semantics = [#tpu.dimension_semantics<parallel>], iteration_bounds = array<i64: 2>, scalar_prefetch = 0 : i64, scratch_operands = 0 : i64, tpu.core_type = #tpu.core_type<tc>, window_params = [{transform_indices = @transform_0, window_bounds = array<i64: 1, 4, 256>}, {pipeline_mode = #tpu.pipeline_mode<synchronous>, transform_indices = @transform_1, window_bounds = array<i64: 4, 1>}, {pipeline_mode = #tpu.pipeline_mode<synchronous>, transform_indices = @transform_2, window_bounds = array<i64: 4, 1>}, {pipeline_mode = #tpu.pipeline_mode<synchronous>, transform_indices = @transform_3, window_bounds = array<i64: 2, 4, 4>}, {pipeline_mode = #tpu.pipeline_mode<synchronous>, transform_indices = @transform_4, window_bounds = array<i64: 256, 64>}, {transform_indices = @transform_5, window_bounds = array<i64: 1, 4, 128>}]} {
    %c0 = arith.constant 0 : index
    %c0_0 = arith.constant 0 : index
    %c0_1 = arith.constant 0 : index
    %0 = vector.load %arg1[%c0, %c0_0, %c0_1] : memref<1x4x256xf32, #tpu.memory_space<vmem>>, vector<1x4x256xf32>
    %1 = vector.shape_cast %0 : vector<1x4x256xf32> to vector<4x256xf32>
    %c0_2 = arith.constant 0 : index
    %c0_3 = arith.constant 0 : index
    %2 = vector.load %arg2[%c0_2, %c0_3] : memref<4x1xf32, #tpu.memory_space<vmem>>, vector<4x1xf32>
    %3 = vector.broadcast %2 : vector<4x1xf32> to vector<4x256xf32>
    %4 = arith.mulf %1, %3 : vector<4x256xf32>
    %c0_4 = arith.constant 0 : index
    %c0_5 = arith.constant 0 : index
    %5 = vector.load %arg3[%c0_4, %c0_5] : memref<4x1xf32, #tpu.memory_space<vmem>>, vector<4x1xf32>
    %6 = vector.broadcast %5 : vector<4x1xf32> to vector<4x256xf32>
    %7 = arith.addf %4, %6 : vector<4x256xf32>
    %cst = arith.constant 0.000000e+00 : f32
    %8 = vector.broadcast %cst : f32 to vector<4x256xf32>
    %9 = arith.maximumf %7, %8 : vector<4x256xf32>
    %10 = arith.truncf %9 : vector<4x256xf32> to vector<4x256xbf16>
    %c0_6 = arith.constant 0 : index
    %c0_7 = arith.constant 0 : index
    %11 = vector.load %arg5[%c0_6, %c0_7] : memref<256x64xbf16, #tpu.memory_space<vmem>>, vector<256x64xbf16>
    %cst_8 = arith.constant dense<0.000000e+00> : vector<4x64xf32>
    %12 = tpu.matmul %10, %11, %cst_8 {dimension_numbers = #tpu.dot_dimension_numbers<[1], [0], [0], [1], [0, 0, 1, 1], [], []>} : vector<4x256xbf16>, vector<256x64xbf16>, vector<4x64xf32> -> vector<4x64xf32>
    %13 = arith.truncf %12 : vector<4x64xf32> to vector<4x64xbf16>
    %c0_9 = arith.constant 0 : index
    %c0_10 = arith.constant 0 : index
    %c0_11 = arith.constant 0 : index
    %14 = vector.load %arg4[%c0_9, %c0_10, %c0_11] : memref<2x4x4xbf16, #tpu.memory_space<vmem>>, vector<1x4x4xbf16>
    %15 = vector.shape_cast %14 : vector<1x4x4xbf16> to vector<4x4xbf16>
    %cst_12 = arith.constant dense<0.000000e+00> : vector<4x64xf32>
    %16 = tpu.matmul %15, %13, %cst_12 {dimension_numbers = #tpu.dot_dimension_numbers<[1], [0], [0], [1], [0, 0, 1, 1], [], []>} : vector<4x4xbf16>, vector<4x64xbf16>, vector<4x64xf32> -> vector<4x64xf32>
    %c1 = arith.constant 1 : index
    %c0_13 = arith.constant 0 : index
    %c0_14 = arith.constant 0 : index
    %17 = vector.load %arg4[%c1, %c0_13, %c0_14] : memref<2x4x4xbf16, #tpu.memory_space<vmem>>, vector<1x4x4xbf16>
    %18 = vector.shape_cast %17 : vector<1x4x4xbf16> to vector<4x4xbf16>
    %cst_15 = arith.constant dense<0.000000e+00> : vector<4x64xf32>
    %19 = tpu.matmul %18, %13, %cst_15 {dimension_numbers = #tpu.dot_dimension_numbers<[1], [0], [0], [1], [0, 0, 1, 1], [], []>} : vector<4x4xbf16>, vector<4x64xbf16>, vector<4x64xf32> -> vector<4x64xf32>
    %20 = tpu.concatenate %16, %19 in 1 : vector<4x64xf32>, vector<4x64xf32> -> vector<4x128xf32>
    %c0_16 = arith.constant 0 : index
    %c0_17 = arith.constant 0 : index
    %c0_18 = arith.constant 0 : index
    %21 = vector.load %arg6[%c0_16, %c0_17, %c0_18] : memref<1x4x128xf32, #tpu.memory_space<vmem>>, vector<1x4x128xf32>
    %22 = vector.shape_cast %21 : vector<1x4x128xf32> to vector<4x128xf32>
    %23 = vector.shape_cast %20 : vector<4x128xf32> to vector<1x4x128xf32>
    tpu.vector_store %arg6[%c0_16, %c0_17, %c0_18], %23 {strides = array<i32>} : memref<1x4x128xf32, #tpu.memory_space<vmem>>, vector<1x4x128xf32>,
    return
  }
  func.func @transform_0(%arg0: i32) -> (i32, i32, i32) {
    %c0_i32 = arith.constant 0 : i32
    %c0_i32_0 = arith.constant 0 : i32
    %c0_i32_1 = arith.constant 0 : i32
    return %arg0, %c0_i32, %c0_i32_0 : i32, i32, i32
  }
  func.func @transform_1(%arg0: i32) -> (i32, i32) {
    %c0_i32 = arith.constant 0 : i32
    %c0_i32_0 = arith.constant 0 : i32
    %c0_i32_1 = arith.constant 0 : i32
    return %c0_i32, %c0_i32_0 : i32, i32
  }
  func.func @transform_2(%arg0: i32) -> (i32, i32) {
    %c0_i32 = arith.constant 0 : i32
    %c0_i32_0 = arith.constant 0 : i32
    %c0_i32_1 = arith.constant 0 : i32
    return %c0_i32, %c0_i32_0 : i32, i32
  }
  func.func @transform_3(%arg0: i32) -> (i32, i32, i32) {
    %c0_i32 = arith.constant 0 : i32
    %c0_i32_0 = arith.constant 0 : i32
    %c0_i32_1 = arith.constant 0 : i32
    %c0_i32_2 = arith.constant 0 : i32
    return %c0_i32, %c0_i32_0, %c0_i32_1 : i32, i32, i32
  }
  func.func @transform_4(%arg0: i32) -> (i32, i32) {
    %c0_i32 = arith.constant 0 : i32
    %c0_i32_0 = arith.constant 0 : i32
    %c0_i32_1 = arith.constant 0 : i32
    return %c0_i32, %c0_i32_0 : i32, i32
  }
  func.func @transform_5(%arg0: i32) -> (i32, i32, i32) {
    %c0_i32 = arith.constant 0 : i32
    %c0_i32_0 = arith.constant 0 : i32
    %c0_i32_1 = arith.constant 0 : i32
    return %arg0, %c0_i32, %c0_i32_0 : i32, i32, i32
  }
}

</mosaic_0001>

<bundles_post_ra>
// kernel: tpu_custom_call.1
= control target key start
LH: loop header
LB: loop body
LE: loop exit
PB: predicated region body
PF: predicated region fallthrough
CT: control target
= control target key end

     0   :  { %10 = vsyncpa [#allocation3], 0  ;;  %s913_s0 = inlined_call_operand.vmem [shape: f32[2,4,256], index: 0, kind: input, shape index: {}]   ;;  %s914_s1 = inlined_call_operand.vmem [shape: f32[4,1], index: 1, kind: input, shape index: {}]   ;;  %s915_s2 = inlined_call_operand.vmem [shape: f32[4,1], index: 2, kind: input, shape index: {}]   ;;  %s916_s3 = inlined_call_operand.vmem [shape: bf16[2,4,4], index: 3, kind: input, shape index: {}]   ;;  %s917_s4 = inlined_call_operand.vmem [shape: bf16[256,64], index: 4, kind: input, shape index: {}]   ;;  %s918_s5 = inlined_call_operand.hbm [shape: f32[2,4,128], index: 5, kind: output, shape index: {}]  }
   0x1   :  { %12 = vsyncpa [#allocation3 + $0x1], 0  ;;  %s768_s18 = smov 0   ;;  %s770_s19 = smov 0  }
   0x2   :  { %s772_s20 = smov 0   ;;  %s774_s21 = smov 0  }
   0x3 LB: > { %s789_s22 = sadd.s32 4294967295, %s733_s21   ;;  %s533_s23 = sadd.s32 4294967294, %s733_s21   ;;  %s733_s21 = sphi %s774_s21, %s924_s21   ;;  %s729_s20 = sphi %s772_s20, %s923_s20   ;;  %s725_s19 = sphi %s770_s19, %s922_s19   ;;  %s721_s18 = sphi %s768_s18, %s921_s18  }
   0x4   : > { %s793_s24 = sadd.s32 1, %s733_s21   ;;  %s135_s25 = sadd.s32 1, %s729_s20 }
   0x5   : > { %s132_s26 = ssub.s32 %s733_s21, %s793_s24  ;;  %p145_p0 = scmp.ne.s32.totalorder %s729_s20, %s725_s19 }
   0x6   : > { %p133_p1 = scmp.eq.s32.totalorder %s132_s26, 0  ;;  %p146_p2 = scmp.eq.s32.totalorder %s789_s22, 1 }
   0x7   : > { %p151_p3 = scmp.ne.s32.totalorder %s725_s19, %s721_s18  ;;  %p152_p4 = scmp.eq.s32.totalorder %s533_s23, 1 }
   0x8   : > { %s804_s27 = scalar_select %p133_p1, %s729_s20, %s135_s25  }
   0x9   : > { %p806_p5 = por %p146_p2, %p145_p0  ;;  %p810_p6 = por %p152_p4, %p151_p3 }
   0xa   : > { %p536_p7 = scmp.ge.s32.totalorder %s733_s21, 1  ;;  %p190_p8 = scmp.lt.s32.totalorder %s733_s21, 3 }
   0xc   : > { %p191_p9 = pnand %p536_p7, %p190_p8 }
   0xd   : > { %p218_p10 = scmp.lt.s32.totalorder (!%p191_p9), %s789_s22, 1  ;;  %s737_s23 = smov (!%p191_p9), 64  }
   0xe   : > { %194 = sbr.rel (%p191_p9) target bundleno = 545 (0x221), region = 40  ;;  %s215_s25 = sand.u32 (!%p191_p9), 1, %s725_s19  }
   0xf   : > { %s537_s26 = sshll.u32 (!%p191_p9), %s215_s25, 2  ;;  %s608_s30 = sshll.u32 (!%p191_p9), %s789_s22, 2 }
  0x10   : > { %s469_s8 = scalar_lea.hbm (!%p191_p9), %s918_s5, %s608_s30  ;;  %s459_s12 = scalar_lea.sflag (!%p191_p9), [#allocation3], %s215_s25 }
  0x11   : > { %s473_s11 = sshll.u32 (!%p191_p9), %s469_s8, 4  ;;  %s691_s16 = scalar_lea.hbm (!%p191_p9), %s918_s5, 8  ;;  %s474_s11 = int_to_ptr.hbm [resolvable:$true] %s473_s11 }
  0x13   : > { %v225_v0 = vld [vmem:[%s914_s1] sm:$0xf]  ;;  %v619_v1 = vld [vmem:[%s917_s4 + $0x38] sm:$0xff]  ;;  %v735_v2 = vmov 0   ;;  %v618_v4 = vld [vmem:[%s917_s4 + $0x30] sm:$0xff]  ;;  %s219_s9 = scalar_select %p218_p10, %s789_s22, 1 }
  0x14   : > { %670 = vset.pattern.permute.xlu0 %v735_v2  ;;  %v627_v3 = vld [vmem:[%s917_s4 + $0x78] sm:$0xff]  ;;  %384 = vmatpush.bf16.msra.mxu0 %v619_v1  ;;  %v626_v5 = vld [vmem:[%s917_s4 + $0x70] sm:$0xff]  ;;  %v236_v6 = vld [vmem:[%s915_s2] sm:$0xf]  ;;  %v736_v19 = vmov 839922192  }
  0x15   : > { %228 = vperm.xlu0 %670, %v225_v0   ;;  %397 = vmatpush.bf16.msra.mxu1 %v627_v3  ;;  %v617_v7 = vld [vmem:[%s917_s4 + $0x28] sm:$0xff]  ;;  %v616_v9 = vld [vmem:[%s917_s4 + $0x20] sm:$0xff]  ;;  %v615_v11 = vld [vmem:[%s917_s4 + $0x18] sm:$0xff]  ;;  %v231_v20 = vunpack.c.l.s4 %v736_v19  ;;  %s611_s10 = sshll.u32 %s219_s9, 3  ;;  %vm416_vm0 = vcmask 1041408   ;;  %vm412_vm1 = vcmask 31744  }
  0x16   : > { %v625_v8 = vld [vmem:[%s917_s4 + $0x68] sm:$0xff]  ;;  %v624_v10 = vld [vmem:[%s917_s4 + $0x60] sm:$0xff]  ;;  %v623_v12 = vld [vmem:[%s917_s4 + $0x58] sm:$0xff]  ;;  %s222_s13 = scalar_lea.vmem %s913_s0, %s611_s10  ;;  %s217_s9 = scalar_lea.vmem [#allocation2], %s537_s26  ;;  %vm455_vm2 = vcmask 523264  }
  0x17   : > { %v614_v13 = vld [vmem:[%s917_s4 + $0x10] sm:$0xff]  ;;  %v613_v15 = vld [vmem:[%s917_s4 + $0x8] sm:$0xff]  ;;  %v612_v17 = vld [vmem:[%s917_s4] sm:$0xff]  ;;  %v232_v22 = vunpack.c.0.s8 %v231_v20  ;;  %s471_s10 = sshll.u32 %s217_s9, 4  ;;  %s472_s10 = int_to_ptr.vmem [resolvable:$true] %s471_s10 }
  0x18   : > { %385 = vmatpush.bf16.msra.mxu0 %v618_v4  ;;  %v622_v14 = vld [vmem:[%s917_s4 + $0x50] sm:$0xff]  ;;  %v621_v16 = vld [vmem:[%s917_s4 + $0x48] sm:$0xff]  ;;  %v620_v18 = vld [vmem:[%s917_s4 + $0x40] sm:$0xff] }
  0x19   : > { %398 = vmatpush.bf16.msra.mxu1 %v626_v5  ;;  %v224_v24 = vld [vmem:[%s222_s13] sm:$0xff]  ;;  %s685_s13 = sshra.s32 %s474_s11, 4  ;;  %s686_s13 = int_to_ptr.hbm [resolvable:$true] %s685_s13 }
  0x1a   : > { %v605_v39 = vld [vmem:[%s916_s3 + $0x2] sm:$0x3]  ;;  %v411_v40 = vld [vmem:[%s916_s3] sm:$0x3]  ;;  %s687_s14 = scalar_lea.hbm %s686_s13, 4  ;;  %p692_p0 = scmp.lt.s32.totalorder %s686_s13, %s918_s5 }
  0x1b   : > { %p688_p11 = scmp.ne.s32.totalorder %s686_s13, %s687_s14  ;;  %p693_p1 = scmp.lt.s32.totalorder %s691_s16, %s687_s14 }
  0x1c   : > { %386 = vmatpush.bf16.msra.mxu0 %v617_v7 }
  0x1d   : > { %239 = vperm.xlu0 %670, %v236_v6   ;;  %399 = vmatpush.bf16.msra.mxu1 %v625_v8  ;;  %p689_p12 = pnand %p688_p11, %p806_p5  ;;  %p694_p2 = por %p693_p1, %p692_p0 }
  0x1f   : > { %p690_p13 = pneg %p689_p12 }
  0x20   : > { %387 = vmatpush.bf16.msra.mxu0 %v616_v9 }
  0x21   : > { %400 = vmatpush.bf16.msra.mxu1 %v624_v10  ;;  %p695_p3 = pnand %p694_p2, %p690_p13 }
  0x24   : > { %388 = vmatpush.bf16.msra.mxu0 %v615_v11 }
  0x25   : > { %401 = vmatpush.bf16.msra.mxu1 %v623_v12 }
  0x28   : > { %389 = vmatpush.bf16.msra.mxu0 %v614_v13 }
  0x29   : > { %402 = vmatpush.bf16.msra.mxu1 %v622_v14 }
  0x2c   : > { %390 = vmatpush.bf16.msra.mxu0 %v613_v15 }
  0x2d   : > { %403 = vmatpush.bf16.msra.mxu1 %v621_v16 }
  0x30   : > { %391 = vmatpush.bf16.msra.mxu0 %v612_v17 }
  0x31   : > { %404 = vmatpush.bf16.msra.mxu1 %v620_v18 }
  0x87   : > { %v229_v21 = vpop.permute.xlu0 %228 }
  0x88   : > { %v233_v23 = vperm.slane %v229_v21, %v232_v22 }
  0x8a   : > { %v235_v26 = vmul.f32 %v233_v23, %v224_v24 }
  0x8f   : > { %v240_v25 = vpop.permute.xlu0 %239 }
  0x90   : > { %v244_v27 = vperm.slane %v240_v25, %v232_v22 }
  0x92   : > { %v246_v28 = vadd.f32 %v244_v27, %v235_v26 }
  0x94   : > { %v247_v29 = vmax.f32 %v246_v28, 0.0 }
  0x96   : > { %249 = vst [vmem:[#allocation1] ss:$2 sm:$0xff] %v247_v29 }
  0x9d   : > { %v250_v30 = vld.sshfl [vmem:[#allocation1] sm:$0xff pattern:$0x75316420]  ;;  %v251_v31 = vld.sshfl [vmem:[#allocation1 + $0x8] sm:$0xff pattern:$0x75316420] }
  0x9e   : > { %v254_v32 = vpack.c.bf16 %v250_v30, %v250_v30  ;;  %v255_v33 = vpack.c.bf16 %v251_v31, %v251_v31 }
  0xa0   : > { %392 = vmatmul.bf16.vlgmr.msra.gmra.mxu0 %v254_v32  ;;  %405 = vmatmul.bf16.vlgmr.msra.gmra.mxu1 %v255_v33 }
 0x11d   : > { %v393_v34 = vpop.f32.mrf.mxu0  ;;  %v406_v35 = vpop.f32.mrf.mxu1 }
 0x11e   : > { %v407_v36 = vadd.f32 %v406_v35, %v393_v34 }
 0x120   : > { %v410_v37 = vpack.c.bf16 %v407_v36, %v407_v36 }
 0x122   : > { %v418_v38 = vsel %vm416_vm0, %v410_v37, 0 }
 0x123   : > { %427 = vmatpush.bf16.msra.mxu2 %v418_v38  ;;  %445 = vmatpush.bf16.msra.mxu3 %v418_v38 }
 0x125   : > { %v395_v41 = vpop.f32.mrf.mxu0  ;;  %v408_v42 = vpop.f32.mrf.mxu1 }
 0x126   : > { %606 = vmatmul.msk.bf16.vlgmr.msra.gmra.mxu3 %vm412_vm1, %v605_v39  ;;  %604 = vmatmul.msk.bf16.vlgmr.msra.gmra.mxu2 %vm412_vm1, %v411_v40 }
 0x1a9   : > { %v447_v43 = vpop.f32.mrf.mxu3  ;;  %v429_v44 = vpop.f32.mrf.mxu2 }
 0x1aa   : > { %452 = vrot.lane.b32.xlu1 %v447_v43, %s737_s23 }
 0x1b1   : > { %v449_v45 = vpop.f32.mrf.mxu3  ;;  %v431_v46 = vpop.f32.mrf.mxu2 }
 0x21c   : > { %v453_v47 = vpop.permute.xlu1 %452 }
 0x21d   : > { %v456_v48 = vsel %vm455_vm2, %v429_v44, %v453_v47 }
 0x21e   : > { %457 = vst [vmem:[%s217_s9] sm:$0xf] %v456_v48 }
 0x21f   : > { %698 = shalt.err (!%p695_p3)
}
 0x220   : > { %628 = dma.vmem_to_hbm [thread:$0]  (%p806_p5), %s472_s10, 64, %s474_s11, %s459_s12  }
 0x221 PF: > { %p634_p4 = scmp.ge.s32.totalorder %s733_s21, 2  ;;  %s485_s25 = sand.u32 1, %s721_s18  }
 0x222   : > { %s486_s26 = scalar_lea.sflag [#allocation3], %s485_s25 }
 0x223   : > { %p631_p7 = pnand %p634_p4, %p810_p6 }
 0x225   : > { %p632_p8 = pneg %p631_p7 }
 0x227   : > { %716 = dma.done.wait (%p632_p8), %s486_s26, 64  }
 0x228   : > { %718 = vsyncadd (%p632_p8), %s486_s26, 4294967232  ;;  %p15_p9 = scmp.ge.s32.totalorder %s793_s24, 4   ;;  %s921_s18 = smov %s725_s19 }
 0x229   : > { %s922_s19 = smov %s729_s20  ;;  %s923_s20 = smov %s804_s27 }
 0x22a   : > { %s924_s21 = smov %s793_s24  ;;  %17 = sbr.rel (!%p15_p9) target bundleno = 3 (0x3), region = 76 }
 0x22f   :  { %492 = vsyncpa [#allocation3], 1 }
 0x230   :  { %494 = vsyncpa [#allocation3 + $0x1], 1 }

</bundles_post_ra>
